<compile_context>
chip_gen: v6e
topology: v6e:2x2x1
jax: 0.10.0
libtpu: 0.0.40
codegen_flags: <defaults>
</compile_context>

<pallas_src>
import functools

import jax
import jax.numpy as jnp
from jax.experimental import pallas as pl
from jax.experimental.pallas import tpu as pltpu


# ---------------- Pallas kernel ----------------

def _enc_conv_kernel(x_ref, w_ref, scale_ref, bias_ref, o_ref, *, l_tile, K):
    # x_ref:     (1, Cin, L + K - 1)  bf16  whole halo-padded sequence for batch n
    #                                       (index_map constant in the Cout-tile axis -> resident)
    # w_ref:     (K, Cout_t, Cin)     bf16  tap-major conv weights for this Cout tile
    # scale_ref: (Cout_t, 1)          f32   folded BN scale = gamma / sqrt(var + eps)
    # bias_ref:  (Cout_t, 1)          f32   folded BN bias  = beta - mean * scale
    # o_ref:     (1, Cout_t, L)       f32   NCL output tile (no wrapper transpose needed)
    cout_t, L = o_ref.shape[1], o_ref.shape[2]
    n_chunks = L // l_tile
    scale = scale_ref[...]                       # hoisted out of the chunk loop
    bias = bias_ref[...]
    for c in range(n_chunks):                    # static unroll -> all offsets compile-time
        base = c * l_tile
        acc = jnp.zeros((cout_t, l_tile), jnp.float32)   # bounded f32 accumulator (<=~128 KiB)
        for k in range(K):                       # K shifted lane windows of the resident slab
            xk = x_ref[0, :, base + k: base + k + l_tile]          # (Cin, l_tile) bf16
            acc += jnp.dot(w_ref[k], xk, preferred_element_type=jnp.float32)
        y = acc * scale + bias                   # folded BatchNorm (eval), f32 epilogue
        # ReLU; Dropout(eval) = identity
        o_ref[0, :, base: base + l_tile] = jnp.maximum(y, 0.0).astype(o_ref.dtype)


# ---------------- wrapper ----------------

def _choose_tiles(cout, L):
    """Pick (Cout_tile, L_chunk) so the f32 accumulator stays ~<=128 KiB and
    L chunks are multiples of 128 (lane-dense) when possible."""
    if L >= 256 and L % 256 == 0:
        l_tile = 256
    elif L >= 128 and L % 128 == 0:
        l_tile = 128
    else:
        l_tile = L
    budget = max(128, 32768 // l_tile)           # Cout_tile * l_tile <= 32K f32 elems
    cout_tile = cout
    for c in (512, 256, 128):
        if c <= budget and cout >= c and cout % c == 0:
            cout_tile = c
            break
    return cout_tile, l_tile


def encoder_convolutions_pallas(x_ncl, weight, gamma, beta, running_mean,
                                running_var, eps=1e-5):
    """x_ncl: (N, Cin, L) as in PyTorch Conv1d. Returns f32 (N, Cout, L)."""
    N, Cin, L = x_ncl.shape
    Cout, _, K = weight.shape
    assert K % 2 == 1, "same-length Conv1d padding assumes an odd kernel size"
    pad = (K - 1) // 2
    Lp = L + 2 * pad

    cout_tile, l_tile = _choose_tiles(Cout, L)
    n_co = Cout // cout_tile

    # Single wrapper-side prep pass: halo pad along L (NCL layout preserved -> no
    # transpose round trips) and cast the MXU inputs to bf16.  BN(eval) is folded
    # into a per-channel scale/bias applied in-kernel in f32.
    x_pad = jnp.pad(x_ncl, ((0, 0), (0, 0), (pad, pad))).astype(jnp.bfloat16)
    w_koc = jnp.transpose(weight, (2, 0, 1)).astype(jnp.bfloat16)      # (K, Cout, Cin)
    scale = (gamma.astype(jnp.float32)
             / jnp.sqrt(running_var.astype(jnp.float32) + eps)).reshape(Cout, 1)
    bias = (beta.astype(jnp.float32)
            - running_mean.astype(jnp.float32) * scale[:, 0]).reshape(Cout, 1)

    kernel = functools.partial(_enc_conv_kernel, l_tile=l_tile, K=K)

    return pl.pallas_call(
        kernel,
        out_shape=jax.ShapeDtypeStruct((N, Cout, L), jnp.float32),
        grid_spec=pltpu.PrefetchScalarGridSpec(
            num_scalar_prefetch=0,
            grid=(N, n_co),
            in_specs=[
                # whole padded sequence; constant block index over the Cout-tile axis
                pl.BlockSpec((1, Cin, Lp), lambda n, co: (n, 0, 0)),
                # weights / BN params depend only on the Cout tile -> stay resident
                pl.BlockSpec((K, cout_tile, Cin), lambda n, co: (0, co, 0)),
                pl.BlockSpec((cout_tile, 1), lambda n, co: (co, 0)),
                pl.BlockSpec((cout_tile, 1), lambda n, co: (co, 0)),
            ],
            out_specs=pl.BlockSpec((1, cout_tile, L), lambda n, co: (n, co, 0)),
        ),
        compiler_params=pltpu.CompilerParams(
            dimension_semantics=("parallel", "parallel"),
            vmem_limit_bytes=32 * 1024 * 1024),
    )(x_pad, w_koc, scale, bias)


# ---------------- reference (plain JAX, f32) ----------------

def encoder_convolutions_ref(x_ncl, weight, gamma, beta, running_mean,
                             running_var, eps=1e-5):
    K = weight.shape[-1]
    pad = (K - 1) // 2
    y = jax.lax.conv_general_dilated(
        x_ncl, weight, window_strides=(1,), padding=[(pad, pad)],
        dimension_numbers=("NCH", "OIH", "NCH"))
    scale = gamma / jnp.sqrt(running_var + eps)
    bias = beta - running_mean * scale
    y = y * scale[None, :, None] + bias[None, :, None]
    return jnp.maximum(y, 0.0)


if __name__ == "__main__":
    def _run_case(seed, N, Cin, Cout, L, K=5):
        key = jax.random.PRNGKey(seed)
        k1, k2, k3 = jax.random.split(key, 3)
        x = jax.random.normal(k1, (N, Cin, L), dtype=jnp.float32)
        weight = jax.random.normal(k2, (Cout, Cin, K), dtype=jnp.float32) * 0.05
        gamma = jnp.ones((Cout,), jnp.float32)
        beta = jnp.zeros((Cout,), jnp.float32)
        running_mean = jax.random.normal(k3, (Cout,), dtype=jnp.float32) * 0.1
        running_var = jnp.ones((Cout,), jnp.float32)

        out = jax.block_until_ready(
            encoder_convolutions_pallas(x, weight, gamma, beta,
                                        running_mean, running_var))
        ref = encoder_convolutions_ref(x, weight, gamma, beta,
                                       running_mean, running_var)
        assert out.shape == (N, Cout, L)
        # bf16 MXU inputs (f32 accumulation) -> loosened tolerance vs the f32 reference.
        assert jnp.allclose(out, ref, atol=3e-2, rtol=3e-2), "mismatch vs reference"

    # Small shapes consistent with the module (scaled down from 512 channels, K=5).
    _run_case(0, N=2, Cin=32, Cout=128, L=16)
    # Larger case exercising Cout tiling (2 tiles) and the multi-chunk L path (3 chunks).
    _run_case(1, N=2, Cin=64, Cout=512, L=384)
    print("KERNEL_OK")
</pallas_src>

<mosaic_0001>
module attributes {stable_mosaic.version = 11 : i64} {
  func.func @_enc_conv_kernel(%arg0: i32, %arg1: i32, %arg2: memref<1x32x20xbf16, #tpu.memory_space<vmem>>, %arg3: memref<5x128x32xbf16, #tpu.memory_space<vmem>>, %arg4: memref<128x1xf32, #tpu.memory_space<vmem>>, %arg5: memref<128x1xf32, #tpu.memory_space<vmem>>, %arg6: memref<1x128x16xf32, #tpu.memory_space<vmem>>) attributes {dimension_semantics = [#tpu.dimension_semantics<parallel>, #tpu.dimension_semantics<parallel>], iteration_bounds = array<i64: 2, 1>, scalar_prefetch = 0 : i64, scratch_operands = 0 : i64, tpu.core_type = #tpu.core_type<tc>, window_params = [{transform_indices = @transform_0, window_bounds = array<i64: 1, 32, 20>}, {transform_indices = @transform_1, window_bounds = array<i64: 5, 128, 32>}, {transform_indices = @transform_2, window_bounds = array<i64: 128, 1>}, {transform_indices = @transform_3, window_bounds = array<i64: 128, 1>}, {transform_indices = @transform_4, window_bounds = array<i64: 1, 128, 16>}]} {
    %c0 = arith.constant 0 : index
    %c0_0 = arith.constant 0 : index
    %0 = vector.load %arg4[%c0, %c0_0] : memref<128x1xf32, #tpu.memory_space<vmem>>, vector<128x1xf32>
    %c0_1 = arith.constant 0 : index
    %c0_2 = arith.constant 0 : index
    %1 = vector.load %arg5[%c0_1, %c0_2] : memref<128x1xf32, #tpu.memory_space<vmem>>, vector<128x1xf32>
    %cst = arith.constant 0.000000e+00 : f32
    %2 = vector.broadcast %cst : f32 to vector<128x16xf32>
    %c0_3 = arith.constant 0 : index
    %c0_4 = arith.constant 0 : index
    %c0_5 = arith.constant 0 : index
    %3 = vector.load %arg2[%c0_3, %c0_4, %c0_5] : memref<1x32x20xbf16, #tpu.memory_space<vmem>>, vector<1x32x16xbf16>
    %4 = vector.shape_cast %3 : vector<1x32x16xbf16> to vector<32x16xbf16>
    %c0_6 = arith.constant 0 : index
    %c0_7 = arith.constant 0 : index
    %c0_8 = arith.constant 0 : index
    %5 = vector.load %arg3[%c0_6, %c0_7, %c0_8] : memref<5x128x32xbf16, #tpu.memory_space<vmem>>, vector<1x128x32xbf16>
    %6 = vector.shape_cast %5 : vector<1x128x32xbf16> to vector<128x32xbf16>
    %cst_9 = arith.constant dense<0.000000e+00> : vector<128x16xf32>
    %7 = tpu.matmul %6, %4, %cst_9 {dimension_numbers = #tpu.dot_dimension_numbers<[1], [0], [0], [1], [0, 0, 1, 1], [], []>} : vector<128x32xbf16>, vector<32x16xbf16>, vector<128x16xf32> -> vector<128x16xf32>
    %8 = arith.addf %2, %7 : vector<128x16xf32>
    %c0_10 = arith.constant 0 : index
    %c0_11 = arith.constant 0 : index
    %c1 = arith.constant 1 : index
    %9 = vector.load %arg2[%c0_10, %c0_11, %c1] : memref<1x32x20xbf16, #tpu.memory_space<vmem>>, vector<1x32x16xbf16>
    %10 = vector.shape_cast %9 : vector<1x32x16xbf16> to vector<32x16xbf16>
    %c1_12 = arith.constant 1 : index
    %c0_13 = arith.constant 0 : index
    %c0_14 = arith.constant 0 : index
    %11 = vector.load %arg3[%c1_12, %c0_13, %c0_14] : memref<5x128x32xbf16, #tpu.memory_space<vmem>>, vector<1x128x32xbf16>
    %12 = vector.shape_cast %11 : vector<1x128x32xbf16> to vector<128x32xbf16>
    %cst_15 = arith.constant dense<0.000000e+00> : vector<128x16xf32>
    %13 = tpu.matmul %12, %10, %cst_15 {dimension_numbers = #tpu.dot_dimension_numbers<[1], [0], [0], [1], [0, 0, 1, 1], [], []>} : vector<128x32xbf16>, vector<32x16xbf16>, vector<128x16xf32> -> vector<128x16xf32>
    %14 = arith.addf %8, %13 : vector<128x16xf32>
    %c0_16 = arith.constant 0 : index
    %c0_17 = arith.constant 0 : index
    %c2 = arith.constant 2 : index
    %15 = vector.load %arg2[%c0_16, %c0_17, %c2] : memref<1x32x20xbf16, #tpu.memory_space<vmem>>, vector<1x32x16xbf16>
    %16 = vector.shape_cast %15 : vector<1x32x16xbf16> to vector<32x16xbf16>
    %c2_18 = arith.constant 2 : index
    %c0_19 = arith.constant 0 : index
    %c0_20 = arith.constant 0 : index
    %17 = vector.load %arg3[%c2_18, %c0_19, %c0_20] : memref<5x128x32xbf16, #tpu.memory_space<vmem>>, vector<1x128x32xbf16>
    %18 = vector.shape_cast %17 : vector<1x128x32xbf16> to vector<128x32xbf16>
    %cst_21 = arith.constant dense<0.000000e+00> : vector<128x16xf32>
    %19 = tpu.matmul %18, %16, %cst_21 {dimension_numbers = #tpu.dot_dimension_numbers<[1], [0], [0], [1], [0, 0, 1, 1], [], []>} : vector<128x32xbf16>, vector<32x16xbf16>, vector<128x16xf32> -> vector<128x16xf32>
    %20 = arith.addf %14, %19 : vector<128x16xf32>
    %c0_22 = arith.constant 0 : index
    %c0_23 = arith.constant 0 : index
    %c3 = arith.constant 3 : index
    %21 = vector.load %arg2[%c0_22, %c0_23, %c3] : memref<1x32x20xbf16, #tpu.memory_space<vmem>>, vector<1x32x16xbf16>
    %22 = vector.shape_cast %21 : vector<1x32x16xbf16> to vector<32x16xbf16>
    %c3_24 = arith.constant 3 : index
    %c0_25 = arith.constant 0 : index
    %c0_26 = arith.constant 0 : index
    %23 = vector.load %arg3[%c3_24, %c0_25, %c0_26] : memref<5x128x32xbf16, #tpu.memory_space<vmem>>, vector<1x128x32xbf16>
    %24 = vector.shape_cast %23 : vector<1x128x32xbf16> to vector<128x32xbf16>
    %cst_27 = arith.constant dense<0.000000e+00> : vector<128x16xf32>
    %25 = tpu.matmul %24, %22, %cst_27 {dimension_numbers = #tpu.dot_dimension_numbers<[1], [0], [0], [1], [0, 0, 1, 1], [], []>} : vector<128x32xbf16>, vector<32x16xbf16>, vector<128x16xf32> -> vector<128x16xf32>
    %26 = arith.addf %20, %25 : vector<128x16xf32>
    %c0_28 = arith.constant 0 : index
    %c0_29 = arith.constant 0 : index
    %c4 = arith.constant 4 : index
    %27 = vector.load %arg2[%c0_28, %c0_29, %c4] : memref<1x32x20xbf16, #tpu.memory_space<vmem>>, vector<1x32x16xbf16>
    %28 = vector.shape_cast %27 : vector<1x32x16xbf16> to vector<32x16xbf16>
    %c4_30 = arith.constant 4 : index
    %c0_31 = arith.constant 0 : index
    %c0_32 = arith.constant 0 : index
    %29 = vector.load %arg3[%c4_30, %c0_31, %c0_32] : memref<5x128x32xbf16, #tpu.memory_space<vmem>>, vector<1x128x32xbf16>
    %30 = vector.shape_cast %29 : vector<1x128x32xbf16> to vector<128x32xbf16>
    %cst_33 = arith.constant dense<0.000000e+00> : vector<128x16xf32>
    %31 = tpu.matmul %30, %28, %cst_33 {dimension_numbers = #tpu.dot_dimension_numbers<[1], [0], [0], [1], [0, 0, 1, 1], [], []>} : vector<128x32xbf16>, vector<32x16xbf16>, vector<128x16xf32> -> vector<128x16xf32>
    %32 = arith.addf %26, %31 : vector<128x16xf32>
    %33 = vector.broadcast %0 : vector<128x1xf32> to vector<128x16xf32>
    %34 = arith.mulf %32, %33 : vector<128x16xf32>
    %35 = vector.broadcast %1 : vector<128x1xf32> to vector<128x16xf32>
    %36 = arith.addf %34, %35 : vector<128x16xf32>
    %cst_34 = arith.constant 0.000000e+00 : f32
    %37 = vector.broadcast %cst_34 : f32 to vector<128x16xf32>
    %38 = arith.maximumf %36, %37 : vector<128x16xf32>
    %c0_35 = arith.constant 0 : index
    %c0_36 = arith.constant 0 : index
    %c0_37 = arith.constant 0 : index
    %39 = vector.load %arg6[%c0_35, %c0_36, %c0_37] : memref<1x128x16xf32, #tpu.memory_space<vmem>>, vector<1x128x16xf32>
    %40 = vector.shape_cast %39 : vector<1x128x16xf32> to vector<128x16xf32>
    %41 = vector.shape_cast %38 : vector<128x16xf32> to vector<1x128x16xf32>
    tpu.vector_store %arg6[%c0_35, %c0_36, %c0_37], %41 {strides = array<i32>} : memref<1x128x16xf32, #tpu.memory_space<vmem>>, vector<1x128x16xf32>,
    return
  }
  func.func @transform_0(%arg0: i32, %arg1: i32) -> (i32, i32, i32) {
    %c0_i32 = arith.constant 0 : i32
    %c0_i32_0 = arith.constant 0 : i32
    %c0_i32_1 = arith.constant 0 : i32
    return %arg0, %c0_i32, %c0_i32_0 : i32, i32, i32
  }
  func.func @transform_1(%arg0: i32, %arg1: i32) -> (i32, i32, i32) {
    %c0_i32 = arith.constant 0 : i32
    %c0_i32_0 = arith.constant 0 : i32
    %c0_i32_1 = arith.constant 0 : i32
    return %c0_i32, %arg1, %c0_i32_0 : i32, i32, i32
  }
  func.func @transform_2(%arg0: i32, %arg1: i32) -> (i32, i32) {
    %c0_i32 = arith.constant 0 : i32
    %c0_i32_0 = arith.constant 0 : i32
    return %arg1, %c0_i32 : i32, i32
  }
  func.func @transform_3(%arg0: i32, %arg1: i32) -> (i32, i32) {
    %c0_i32 = arith.constant 0 : i32
    %c0_i32_0 = arith.constant 0 : i32
    return %arg1, %c0_i32 : i32, i32
  }
  func.func @transform_4(%arg0: i32, %arg1: i32) -> (i32, i32, i32) {
    %c0_i32 = arith.constant 0 : i32
    %c0_i32_0 = arith.constant 0 : i32
    return %arg0, %arg1, %c0_i32 : i32, i32, i32
  }
}

</mosaic_0001>

<bundles_post_ra>
// kernel: tpu_custom_call.1
= control target key start
LH: loop header
LB: loop body
LE: loop exit
PB: predicated region body
PF: predicated region fallthrough
CT: control target
= control target key end

     0   :  { %s2092_s15 = smov 0   ;;  %s2094_s16 = smov 0   ;;  %s2600_s0 = inlined_call_operand.vmem [shape: bf16[2,32,20], index: 0, kind: input, shape index: {}]   ;;  %s2601_s1 = inlined_call_operand.vmem [shape: bf16[5,128,32], index: 1, kind: input, shape index: {}]   ;;  %s2602_s2 = inlined_call_operand.vmem [shape: f32[128,1], index: 2, kind: input, shape index: {}]   ;;  %s2603_s3 = inlined_call_operand.vmem [shape: f32[128,1], index: 3, kind: input, shape index: {}]   ;;  %s2604_s4 = inlined_call_operand.vmem [shape: f32[2,128,16], index: 4, kind: output, shape index: {}]  }
   0x1   :  { %s2096_s17 = smov 0  }
   0x2 LB: > { %s26_s18 = sadd.s32 1, %s2056_s16  ;;  %p1656_p0 = scmp.ge.s32.totalorder %s2060_s17, 1  ;;  %s2060_s17 = sphi %s2096_s17, %s14_s17   ;;  %s2056_s16 = sphi %s2094_s16, %s2642_s16   ;;  %s2052_s15 = sphi %s2092_s15, %s2641_s15  }
   0x3   : > { %p28_p1 = scmp.ge.s32.totalorder %s26_s18, 2  ;;  %p209_p2 = scmp.lt.s32.totalorder %s2060_s17, 3 }
   0x5   : > { %s2644_s18 = smov (%p28_p1, %s26_s18), 0  ;;  %p210_p3 = pnand %p1656_p0, %p209_p2 }
   0x7   : > { %213 = sbr.rel (%p210_p3) target bundleno = 423 (0x1a7), region = 36 }
   0xc   : > { %p254_p4 = scmp.lt.s32.totalorder %s2052_s15, 1  ;;  %v1998_v0 = vld [vmem:[%s2601_s1 + $0x40] sm:$0xff]   ;;  %vm413_vm0 = vcmask 261120   ;;  %s2062_s27 = smov 127   ;;  %v2066_v4 = vmov 0   ;;  %v289_v5 = vld [vmem:[%s2602_s2 + $0x8] sm:$0xff] }
   0xd   : > { %v1999_v1 = vld [vmem:[%s2601_s1 + $0x60] sm:$0xff]   ;;  %1865 = vmatprep.mubr.msk.bf16.mxu0 %vm413_vm0, %v1998_v0  ;;  %s2063_s28 = smov 126   ;;  %s2064_s29 = smov 125   ;;  %1995 = vset.pattern.permute.xlu1 %v2066_v4  ;;  %v290_v7 = vld [vmem:[%s2602_s2 + $0x10] sm:$0xff]  ;;  %v291_v8 = vld [vmem:[%s2602_s2 + $0x18] sm:$0xff]  ;;  %vm1506_vm1 = vcmask 130048  }
   0xe   : > { %s2646_s15 = smov (!%p254_p4, %s2052_s15), 1  ;;  %1873 = vmatprep.mubr.msk.bf16.mxu1 %vm413_vm0, %v1999_v1  ;;  %s2065_s30 = smov 124   ;;  %1994 = vset.pattern.permute.xlu0 %v2066_v4  ;;  %v288_v6 = vld [vmem:[%s2602_s2] sm:$0xff]  ;;  %v293_v10 = vld [vmem:[%s2602_s2 + $0x28] sm:$0xff]  ;;  %v294_v11 = vld [vmem:[%s2602_s2 + $0x30] sm:$0xff] }
   0xf   : > { %s1809_s23 = sshll.u32 %s2646_s15, 4  ;;  %v292_v9 = vld [vmem:[%s2602_s2 + $0x20] sm:$0xff]  ;;  %v295_v12 = vld [vmem:[%s2602_s2 + $0x38] sm:$0xff]  ;;  %v297_v14 = vld [vmem:[%s2602_s2 + $0x48] sm:$0xff]  ;;  %s1810_s13 = sshll.u32 %s2646_s15, 7 }
  0x10   : > { %s258_s26 = scalar_lea.vmem %s2600_s0, %s1809_s23  ;;  %v296_v13 = vld [vmem:[%s2602_s2 + $0x40] sm:$0xff]  ;;  %v298_v15 = vld [vmem:[%s2602_s2 + $0x50] sm:$0xff]  ;;  %v299_v16 = vld [vmem:[%s2602_s2 + $0x58] sm:$0xff]  ;;  %s2505_s15 = scalar_lea.vmem %s2604_s4, %s1810_s13 }
  0x11   : > { %v2124_v2 = vld [vmem:[%s258_s26 + $0x8] sm:$0xff]   ;;  %v2127_v3 = vld [vmem:[%s258_s26] sm:$0xff]   ;;  %v302_v19 = vld [vmem:[%s2602_s2 + $0x70] sm:$0xff] }
  0x12   : > { %409 = vrot.lane.b32.xlu0 %v2124_v2, %s2062_s27  ;;  %757 = vrot.lane.b32.xlu1 %v2124_v2, %s2063_s28  ;;  %v300_v17 = vld [vmem:[%s2602_s2 + $0x60] sm:$0xff]  ;;  %v301_v18 = vld [vmem:[%s2602_s2 + $0x68] sm:$0xff] }
  0x13   : > { %v303_v20 = vld [vmem:[%s2602_s2 + $0x78] sm:$0xff]  ;;  %v304_v21 = vld [vmem:[%s2603_s3] sm:$0xff]  ;;  %v305_v22 = vld [vmem:[%s2603_s3 + $0x8] sm:$0xff] }
  0x14   : > { %v306_v23 = vld [vmem:[%s2603_s3 + $0x10] sm:$0xff]  ;;  %v307_v24 = vld [vmem:[%s2603_s3 + $0x18] sm:$0xff]  ;;  %v308_v25 = vld [vmem:[%s2603_s3 + $0x20] sm:$0xff] }
  0x15   : > { %v309_v26 = vld [vmem:[%s2603_s3 + $0x28] sm:$0xff]  ;;  %v310_v27 = vld [vmem:[%s2603_s3 + $0x30] sm:$0xff]  ;;  %v311_v28 = vld [vmem:[%s2603_s3 + $0x38] sm:$0xff] }
  0x16   : > { %407 = vrot.lane.b32.xlu0 %v2127_v3, %s2062_s27  ;;  %755 = vrot.lane.b32.xlu1 %v2127_v3, %s2063_s28  ;;  %v312_v29 = vld [vmem:[%s2603_s3 + $0x40] sm:$0xff]  ;;  %v313_v30 = vld [vmem:[%s2603_s3 + $0x48] sm:$0xff] }
  0x17   : > { %v314_v31 = vld [vmem:[%s2603_s3 + $0x50] sm:$0xff]  ;;  %v315_v32 = vld [vmem:[%s2603_s3 + $0x58] sm:$0xff]  ;;  %v316_v33 = vld [vmem:[%s2603_s3 + $0x60] sm:$0xff] }
  0x18   : > { %v317_v34 = vld [vmem:[%s2603_s3 + $0x68] sm:$0xff]  ;;  %v318_v35 = vld [vmem:[%s2603_s3 + $0x70] sm:$0xff]  ;;  %v319_v36 = vld [vmem:[%s2603_s3 + $0x78] sm:$0xff] }
  0x19   : > { %v2000_v40 = vld [vmem:[%s2601_s1 + $0x48] sm:$0xff]   ;;  %v2002_v42 = vld [vmem:[%s2601_s1 + $0x50] sm:$0xff]   ;;  %v2004_v47 = vld [vmem:[%s2601_s1 + $0x58] sm:$0xff]  }
  0x1a   : > { %957 = vrot.lane.b32.xlu0 %v2124_v2, %s2064_s29  ;;  %1157 = vrot.lane.b32.xlu1 %v2124_v2, %s2065_s30  ;;  %v2001_v41 = vld [vmem:[%s2601_s1 + $0x68] sm:$0xff]   ;;  %v2003_v43 = vld [vmem:[%s2601_s1 + $0x70] sm:$0xff]  }
  0x1b   : > { %v2005_v48 = vld [vmem:[%s2601_s1 + $0x78] sm:$0xff]   ;;  %v2006_v49 = vld [vmem:[%s2601_s1] sm:$0xff]   ;;  %v2008_v51 = vld [vmem:[%s2601_s1 + $0x8] sm:$0xff]  }
  0x1c   : > { %v2007_v50 = vld [vmem:[%s2601_s1 + $0x80] sm:$0xff]   ;;  %v2009_v52 = vld [vmem:[%s2601_s1 + $0x88] sm:$0xff]   ;;  %v2010_v53 = vld [vmem:[%s2601_s1 + $0x10] sm:$0xff]  }
  0x1d   : > { %v2011_v54 = vld [vmem:[%s2601_s1 + $0x90] sm:$0xff]   ;;  %v2012_v57 = vld [vmem:[%s2601_s1 + $0x18] sm:$0xff]   ;;  %v2014_v59 = vld [vmem:[%s2601_s1 + $0x20] sm:$0xff]  }
  0x1e   : > { %955 = vrot.lane.b32.xlu0 %v2127_v3, %s2064_s29  ;;  %1155 = vrot.lane.b32.xlu1 %v2127_v3, %s2065_s30  ;;  %v2013_v58 = vld [vmem:[%s2601_s1 + $0x98] sm:$0xff]   ;;  %v2015_v60 = vld [vmem:[%s2601_s1 + $0xa0] sm:$0xff]  }
  0x1f   : > { %v2016_v61 = vld [vmem:[%s2601_s1 + $0x28] sm:$0xff]   ;;  %v2018_v63 = vld [vmem:[%s2601_s1 + $0x30] sm:$0xff]   ;;  %v2020_v1 = vld [vmem:[%s2601_s1 + $0x38] sm:$0xff]  }
  0x20   : > { %v2017_v62 = vld [vmem:[%s2601_s1 + $0xa8] sm:$0xff]   ;;  %v2019_v0 = vld [vmem:[%s2601_s1 + $0xb0] sm:$0xff]   ;;  %v2023_v4 = vld [vmem:[%s2601_s1 + $0x100] sm:$0xff]  }
  0x22   : > { %1305 = vperm.xlu1 %1995, %v289_v5   ;;  %1300 = vperm.xlu0 %1994, %v288_v6   ;;  %v2024_v5 = vld [vmem:[%s2601_s1 + $0xc8] sm:$0xff]  }
  0x23   : > { %v2025_v6 = vld [vmem:[%s2601_s1 + $0x108] sm:$0xff]  }
  0x26   : > { %1310 = vperm.xlu1 %1995, %v290_v7   ;;  %1315 = vperm.xlu0 %1994, %v291_v8   ;;  %v2026_v7 = vld [vmem:[%s2601_s1 + $0xd0] sm:$0xff]  }
  0x27   : > { %v2027_v8 = vld [vmem:[%s2601_s1 + $0x110] sm:$0xff]  }
  0x2a   : > { %1320 = vperm.xlu1 %1995, %v292_v9   ;;  %1325 = vperm.xlu0 %1994, %v293_v10   ;;  %v2028_v9 = vld [vmem:[%s2601_s1 + $0xd8] sm:$0xff]  }
  0x2b   : > { %v2029_v10 = vld [vmem:[%s2601_s1 + $0x118] sm:$0xff]  }
  0x2e   : > { %1330 = vperm.xlu1 %1995, %v294_v11   ;;  %1335 = vperm.xlu0 %1994, %v295_v12   ;;  %v2030_v11 = vld [vmem:[%s2601_s1 + $0xe0] sm:$0xff]  }
  0x2f   : > { %v2031_v12 = vld [vmem:[%s2601_s1 + $0x120] sm:$0xff]  }
  0x32   : > { %1340 = vperm.xlu1 %1995, %v296_v13   ;;  %1345 = vperm.xlu0 %1994, %v297_v14   ;;  %v2032_v13 = vld [vmem:[%s2601_s1 + $0xe8] sm:$0xff]  }
  0x33   : > { %v2033_v14 = vld [vmem:[%s2601_s1 + $0x128] sm:$0xff]  }
  0x36   : > { %1350 = vperm.xlu1 %1995, %v298_v15   ;;  %1355 = vperm.xlu0 %1994, %v299_v16   ;;  %v2034_v15 = vld [vmem:[%s2601_s1 + $0xf0] sm:$0xff]  }
  0x37   : > { %v2035_v16 = vld [vmem:[%s2601_s1 + $0x130] sm:$0xff]  }
  0x3a   : > { %1360 = vperm.xlu1 %1995, %v300_v17   ;;  %1365 = vperm.xlu0 %1994, %v301_v18   ;;  %v2036_v17 = vld [vmem:[%s2601_s1 + $0xf8] sm:$0xff]  }
  0x3b   : > { %v2037_v18 = vld [vmem:[%s2601_s1 + $0x138] sm:$0xff]  }
  0x3e   : > { %1370 = vperm.xlu1 %1995, %v302_v19   ;;  %1375 = vperm.xlu0 %1994, %v303_v20  }
  0x42   : > { %1396 = vperm.xlu1 %1995, %v304_v21   ;;  %1401 = vperm.xlu0 %1994, %v305_v22  }
  0x46   : > { %1406 = vperm.xlu1 %1995, %v306_v23   ;;  %1411 = vperm.xlu0 %1994, %v307_v24  }
  0x4a   : > { %1416 = vperm.xlu1 %1995, %v308_v25   ;;  %1421 = vperm.xlu0 %1994, %v309_v26  }
  0x4e   : > { %1426 = vperm.xlu1 %1995, %v310_v27   ;;  %1431 = vperm.xlu0 %1994, %v311_v28  }
  0x52   : > { %1436 = vperm.xlu1 %1995, %v312_v29   ;;  %1441 = vperm.xlu0 %1994, %v313_v30  }
  0x56   : > { %1446 = vperm.xlu1 %1995, %v314_v31   ;;  %1451 = vperm.xlu0 %1994, %v315_v32  }
  0x5a   : > { %1456 = vperm.xlu1 %1995, %v316_v33   ;;  %1461 = vperm.xlu0 %1994, %v317_v34  }
  0x5e   : > { %1466 = vperm.xlu1 %1995, %v318_v35   ;;  %1471 = vperm.xlu0 %1994, %v319_v36  }
  0x84   : > { %v410_v37 = vpop.permute.xlu0 %409  ;;  %v758_v38 = vpop.permute.xlu1 %757 }
  0x85   : > { %1861 = vmatprep.subr.bf16.mxu0 %v410_v37  ;;  %1961 = vmatprep.subr.bf16.mxu1 %v410_v37 }
  0x86   : > { %1862 = vmatpush3.bf16.msra.mxu0 %v410_v37  ;;  %1963 = vmatpush3.bf16.msra.mxu1 %v410_v37 }
  0x88   : > { %v408_v39 = vpop.permute.xlu0 %407  ;;  %v756_v44 = vpop.permute.xlu1 %755 }
  0x89   : > { %1863 = vmatprep.subr.bf16.mxu0 %v408_v39  ;;  %1962 = vmatprep.subr.bf16.mxu1 %v408_v39 }
  0x8a   : > { %1864 = vmatpush3.bf16.msra.mxu0 %v408_v39  ;;  %1964 = vmatpush3.bf16.msra.mxu1 %v408_v39 }
  0x8b   : > { %1881 = vmatprep.subr.bf16.mxu1 %v2124_v2  ;;  %1901 = vmatprep.subr.bf16.mxu0 %v758_v38 }
  0x8c   : > { %v958_v45 = vpop.permute.xlu0 %957  ;;  %v1158_v46 = vpop.permute.xlu1 %1157 }
  0x8d   : > { %1866 = vmatmul.mubr.msk.bf16.vlgmr.msra.gmra.mxu0 %vm413_vm0, %v2000_v40  ;;  %1874 = vmatmul.mubr.msk.bf16.vlgmr.msra.gmra.mxu1 %vm413_vm0, %v2001_v41 }
  0x8e   : > { %1882 = vmatpush3.bf16.msra.mxu1 %v2124_v2  ;;  %1902 = vmatpush3.bf16.msra.mxu0 %v758_v38  ;;  %v2021_v2 = vld [vmem:[%s2601_s1 + $0xb8] sm:$0xff]  }
  0x8f   : > { %1869 = vmatprep.mubr.msk.bf16.mxu0 %vm413_vm0, %v2002_v42  ;;  %1877 = vmatprep.mubr.msk.bf16.mxu1 %vm413_vm0, %v2003_v43 }
  0x90   : > { %1883 = vmatprep.subr.bf16.mxu1 %v2127_v3  ;;  %1903 = vmatprep.subr.bf16.mxu0 %v756_v44  ;;  %v956_v55 = vpop.permute.xlu0 %955  ;;  %v1156_v56 = vpop.permute.xlu1 %1155 }
  0x92   : > { %1884 = vmatpush3.bf16.msra.mxu1 %v2127_v3  ;;  %1904 = vmatpush3.bf16.msra.mxu0 %v756_v44  ;;  %v2022_v3 = vld [vmem:[%s2601_s1 + $0xc0] sm:$0xff]  }
  0x93   : > { %1921 = vmatprep.subr.bf16.mxu1 %v958_v45  ;;  %1941 = vmatprep.subr.bf16.mxu0 %v1158_v46 }
  0x95   : > { %1870 = vmatmul.mubr.msk.bf16.gmra.mxu0 %vm413_vm0, %v2004_v47  ;;  %1878 = vmatmul.mubr.msk.bf16.gmra.mxu1 %vm413_vm0, %v2005_v48 }
  0x96   : > { %1885 = vmatprep.mubr.msk.bf16.mxu1 %vm413_vm0, %v2006_v49  ;;  %1905 = vmatprep.mubr.msk.bf16.mxu0 %vm413_vm0, %v2007_v50 }
  0x9d   : > { %1886 = vmatmul.mubr.msk.bf16.vlgmr.msra.gmra.mxu1 %vm413_vm0, %v2008_v51  ;;  %1906 = vmatmul.mubr.msk.bf16.vlgmr.msra.gmra.mxu0 %vm413_vm0, %v2009_v52  ;;  %v2388_v19 = vpop.permute.xlu1 %1305  ;;  %v2390_v20 = vpop.permute.xlu0 %1300 }
  0x9e   : > { %1922 = vmatpush3.bf16.msra.mxu1 %v958_v45  ;;  %1942 = vmatpush3.bf16.msra.mxu0 %v1158_v46 }
  0x9f   : > { %1889 = vmatprep.mubr.msk.bf16.mxu1 %vm413_vm0, %v2010_v53  ;;  %1909 = vmatprep.mubr.msk.bf16.mxu0 %vm413_vm0, %v2011_v54 }
  0xa0   : > { %1923 = vmatprep.subr.bf16.mxu1 %v956_v55  ;;  %1943 = vmatprep.subr.bf16.mxu0 %v1156_v56 }
  0xa1   : > { %v2392_v21 = vpop.permute.xlu1 %1310  ;;  %v2394_v22 = vpop.permute.xlu0 %1315 }
  0xa2   : > { %1924 = vmatpush3.bf16.msra.mxu1 %v956_v55  ;;  %1944 = vmatpush3.bf16.msra.mxu0 %v1156_v56 }
  0xa5   : > { %1890 = vmatmul.mubr.msk.bf16.gmra.mxu1 %vm413_vm0, %v2012_v57  ;;  %1910 = vmatmul.mubr.msk.bf16.gmra.mxu0 %vm413_vm0, %v2013_v58  ;;  %v2396_v23 = vpop.permute.xlu1 %1320  ;;  %v2406_v30 = vpop.permute.xlu0 %1325 }
  0xa6   : > { %1893 = vmatprep.mubr.msk.bf16.mxu1 %vm413_vm0, %v2014_v59  ;;  %1913 = vmatprep.mubr.msk.bf16.mxu0 %vm413_vm0, %v2015_v60 }
  0xa9   : > { %v2408_v31 = vpop.permute.xlu1 %1330  ;;  %v2422_v38 = vpop.permute.xlu0 %1335 }
  0xad   : > { %1894 = vmatmul.mubr.msk.bf16.gmra.mxu1 %vm413_vm0, %v2016_v61  ;;  %1914 = vmatmul.mubr.msk.bf16.gmra.mxu0 %vm413_vm0, %v2017_v62  ;;  %v2424_v39 = vpop.permute.xlu1 %1340  ;;  %v2434_v46 = vpop.permute.xlu0 %1345 }
  0xae   : > { %1897 = vmatprep.mubr.msk.bf16.mxu1 %vm413_vm0, %v2018_v63  ;;  %1917 = vmatprep.mubr.msk.bf16.mxu0 %vm413_vm0, %v2019_v0  ;;  %2606 = vst [vmem:[#allocation3_spill] sm:$0xff] %v2424_v39  ;;  %2609 = vst [vmem:[#allocation6_spill] sm:$0xff] %v2434_v46 }
  0xb1   : > { %v2436_v47 = vpop.permute.xlu1 %1350  ;;  %v2438_v54 = vpop.permute.xlu0 %1355 }
  0xb2   : > { %2610 = vst [vmem:[#allocation7_spill] sm:$0xff] %v2436_v47  ;;  %2611 = vst [vmem:[#allocation8_spill] sm:$0xff] %v2438_v54 }
  0xb5   : > { %1898 = vmatmul.mubr.msk.bf16.gmra.mxu1 %vm413_vm0, %v2020_v1  ;;  %1918 = vmatmul.mubr.msk.bf16.gmra.mxu0 %vm413_vm0, %v2021_v2  ;;  %v2440_v55 = vpop.permute.xlu1 %1360  ;;  %v2448_v62 = vpop.permute.xlu0 %1365 }
  0xb6   : > { %1925 = vmatprep.mubr.msk.bf16.mxu1 %vm413_vm0, %v2022_v3  ;;  %1945 = vmatprep.mubr.msk.bf16.mxu0 %vm413_vm0, %v2023_v4  ;;  %2612 = vst [vmem:[#allocation9_spill] sm:$0xff] %v2440_v55  ;;  %2613 = vst [vmem:[#allocation10_spill] sm:$0xff] %v2448_v62 }
  0xb9   : > { %v2450_v63 = vpop.permute.xlu1 %1370 }
  0xba   : > { %2614 = vst [vmem:[#allocation11_spill] sm:$0xff] %v2450_v63 }
  0xbd   : > { %1926 = vmatmul.mubr.msk.bf16.vlgmr.msra.gmra.mxu1 %vm413_vm0, %v2024_v5  ;;  %1946 = vmatmul.mubr.msk.bf16.vlgmr.msra.gmra.mxu0 %vm413_vm0, %v2025_v6  ;;  %v2462_v6 = vpop.permute.xlu0 %1375 }
  0xbe   : > { %1929 = vmatprep.mubr.msk.bf16.mxu1 %vm413_vm0, %v2026_v7  ;;  %1949 = vmatprep.mubr.msk.bf16.mxu0 %vm413_vm0, %v2027_v8  ;;  %2615 = vst [vmem:[#allocation12_spill] sm:$0xff] %v2462_v6  ;;  %v1397_v7 = vpop.permute.xlu1 %1396 }
  0xc5   : > { %1930 = vmatmul.mubr.msk.bf16.gmra.mxu1 %vm413_vm0, %v2028_v9  ;;  %1950 = vmatmul.mubr.msk.bf16.gmra.mxu0 %vm413_vm0, %v2029_v10 }
  0xc6   : > { %1933 = vmatprep.mubr.msk.bf16.mxu1 %vm413_vm0, %v2030_v11  ;;  %1953 = vmatprep.mubr.msk.bf16.mxu0 %vm413_vm0, %v2031_v12 }
  0xcd   : > { %1934 = vmatmul.mubr.msk.bf16.gmra.mxu1 %vm413_vm0, %v2032_v13  ;;  %1954 = vmatmul.mubr.msk.bf16.gmra.mxu0 %vm413_vm0, %v2033_v14  ;;  %v2476_v14 = vpop.permute.xlu0 %1401 }
  0xce   : > { %1937 = vmatprep.mubr.msk.bf16.mxu1 %vm413_vm0, %v2034_v15  ;;  %1957 = vmatprep.mubr.msk.bf16.mxu0 %vm413_vm0, %v2035_v16  ;;  %v1407_v15 = vpop.permute.xlu1 %1406 }
  0xd1   : > { %v1412_v54 = vpop.permute.xlu0 %1411 }
  0xd2   : > { %v2490_v39 = vpop.permute.xlu1 %1416 }
  0xd5   : > { %1938 = vmatmul.mubr.msk.bf16.gmra.mxu1 %vm413_vm0, %v2036_v17  ;;  %1958 = vmatmul.mubr.msk.bf16.gmra.mxu0 %vm413_vm0, %v2037_v18 }
 0x14d   : > { %v1867_v24 = vpop.f32.mrf.mxu0  ;;  %v2398_v25 = vpop.f32.mrf.mxu1 }
 0x14f   : > { %v472_v26 = vpop.f32.mrf.mxu0  ;;  %v2400_v27 = vpop.f32.mrf.mxu1 }
 0x151   : > { %v2402_v28 = vpop.f32.mrf.mxu0  ;;  %v2404_v29 = vpop.f32.mrf.mxu1 }
 0x153   : > { %v2410_v32 = vpop.f32.mrf.mxu0  ;;  %v2412_v33 = vpop.f32.mrf.mxu1 }
 0x155   : > { %v2414_v34 = vpop.f32.mrf.mxu0  ;;  %v2416_v35 = vpop.f32.mrf.mxu1 }
 0x157   : > { %v2418_v36 = vpop.f32.mrf.mxu0  ;;  %v2420_v37 = vpop.f32.mrf.mxu1 }
 0x158   : > { %2605 = vst [vmem:[#allocation2_spill] sm:$0xff] %v2420_v37 }
 0x159   : > { %v2426_v40 = vpop.f32.mrf.mxu0  ;;  %v2428_v41 = vpop.f32.mrf.mxu1 }
 0x15a   : > { %2607 = vst [vmem:[#allocation4_spill] sm:$0xff] %v2428_v41 }
 0x15b   : > { %v2430_v42 = vpop.f32.mrf.mxu0  ;;  %v2432_v43 = vpop.f32.mrf.mxu1 }
 0x15c   : > { %2608 = vst [vmem:[#allocation5_spill] sm:$0xff] %v2432_v43 }
 0x15d   : > { %v1887_v44 = vpop.f32.mrf.mxu1  ;;  %v1907_v45 = vpop.f32.mrf.mxu0 }
 0x15e   : > { %v644_v18 = vadd.f32 %v1887_v44, %v1867_v24 }
 0x15f   : > { %v635_v48 = vpop.f32.mrf.mxu1  ;;  %v819_v49 = vpop.f32.mrf.mxu0 }
 0x160   : > { %v636_v55 = vadd.f32 %v635_v48, %v472_v26  ;;  %v884_v43 = vadd.f32 %v1907_v45, %v644_v18  ;;  %v2497_v18 = vpop.permute.xlu0 %1421 }
 0x161   : > { %v1888_v50 = vpop.f32.mrf.mxu1  ;;  %v1908_v51 = vpop.f32.mrf.mxu0 }
 0x162   : > { %v647_v41 = vadd.f32 %v1888_v50, %v2402_v28  ;;  %v1427_v28 = vpop.permute.xlu1 %1426 }
 0x163   : > { %v638_v52 = vpop.f32.mrf.mxu1  ;;  %v822_v53 = vpop.f32.mrf.mxu0 }
 0x164   : > { %v639_v24 = vadd.f32 %v638_v52, %v2410_v32  ;;  %v885_v26 = vadd.f32 %v1908_v51, %v647_v41 }
 0x165   : > { %v1891_v56 = vpop.f32.mrf.mxu1  ;;  %v2442_v57 = vpop.f32.mrf.mxu0 }
 0x166   : > { %v883_v50 = vadd.f32 %v822_v53, %v639_v24 }
 0x167   : > { %v651_v58 = vpop.f32.mrf.mxu1  ;;  %v2444_v59 = vpop.f32.mrf.mxu0 }
 0x169   : > { %v1892_v60 = vpop.f32.mrf.mxu1  ;;  %v2446_v61 = vpop.f32.mrf.mxu0 }
 0x16a   : > { %v663_v52 = vadd.f32 %v1892_v60, %v2426_v40 }
 0x16b   : > { %v654_v0 = vpop.f32.mrf.mxu1  ;;  %v2452_v1 = vpop.f32.mrf.mxu0 }
 0x16d   : > { %v2454_v2 = vpop.f32.mrf.mxu1  ;;  %v2456_v3 = vpop.f32.mrf.mxu0 }
 0x16f   : > { %v2458_v4 = vpop.f32.mrf.mxu1  ;;  %v2460_v5 = vpop.f32.mrf.mxu0 }
 0x171   : > { %v2464_v8 = vpop.f32.mrf.mxu1  ;;  %v2466_v9 = vpop.f32.mrf.mxu0 }
 0x173   : > { %v2468_v10 = vpop.f32.mrf.mxu1  ;;  %v2470_v11 = vpop.f32.mrf.mxu0 }
 0x175   : > { %v2472_v12 = vpop.f32.mrf.mxu1  ;;  %v2474_v13 = vpop.f32.mrf.mxu0 }
 0x176   : > { %2616 = vst [vmem:[#allocation13_spill] sm:$0xff] %v2474_v13 }
 0x177   : > { %v2478_v16 = vpop.f32.mrf.mxu1  ;;  %v2480_v17 = vpop.f32.mrf.mxu0 }
 0x178   : > { %2617 = vst [vmem:[#allocation14_spill] sm:$0xff] %v2478_v16  ;;  %2618 = vst [vmem:[#allocation15_spill] sm:$0xff] %v2480_v17  ;;  %v882_v17 = vadd.f32 %v819_v49, %v636_v55  ;;  %v652_v16 = vadd.f32 %v651_v58, %v2418_v36 }
 0x179   : > { %v2482_v62 = vpop.f32.mrf.mxu1  ;;  %v2484_v6 = vpop.f32.mrf.mxu0 }
 0x17a   : > { %2619 = vst [vmem:[#allocation16_spill] sm:$0xff] %v2482_v62  ;;  %2620 = vst [vmem:[#allocation17_spill] sm:$0xff] %v2484_v6 }
 0x17b   : > { %v2486_v63 = vpop.f32.mrf.mxu1  ;;  %v2488_v46 = vpop.f32.mrf.mxu0 }
 0x17c   : > { %2621 = vst [vmem:[#allocation18_spill] sm:$0xff] %v2486_v63  ;;  %2622 = vst [vmem:[#allocation19_spill] sm:$0xff] %v2488_v46  ;;  %v660_v46 = vadd.f32 %v1891_v56, %v2414_v34 }
 0x17d   : > { %v1927_v13 = vpop.f32.mrf.mxu1  ;;  %v1947_v47 = vpop.f32.mrf.mxu0 }
 0x17e   : > { %v1084_v44 = vadd.f32 %v1927_v13, %v884_v43  ;;  %v888_v53 = vadd.f32 %v2442_v57, %v660_v46  ;;  %v1432_v13 = vpop.permute.xlu0 %1431 }
 0x17f   : > { %v1019_v62 = vpop.f32.mrf.mxu1  ;;  %v1219_v6 = vpop.f32.mrf.mxu0 }
 0x180   : > { %v1284_v48 = vadd.f32 %v1947_v47, %v1084_v44  ;;  %v1082_v63 = vadd.f32 %v1019_v62, %v882_v17 }
 0x181   : > { %v1928_v37 = vpop.f32.mrf.mxu1  ;;  %v1948_v45 = vpop.f32.mrf.mxu0 }
 0x182   : > { %v1380_v49 = vmul.f32 %v2392_v21, %v1284_v48  ;;  %v1282_v32 = vadd.f32 %v1219_v6, %v1082_v63  ;;  %v1085_v43 = vadd.f32 %v1928_v37, %v885_v26  ;;  %v886_v21 = vadd.f32 %v2444_v59, %v652_v16 }
 0x183   : > { %v1022_v41 = vpop.f32.mrf.mxu1  ;;  %v1222_v47 = vpop.f32.mrf.mxu0  ;;  %v655_v37 = vadd.f32 %v654_v0, %v2430_v42  ;;  %v889_v63 = vadd.f32 %v2446_v61, %v663_v52  ;;  %v676_v6 = vadd.f32 %v2454_v2, %v2398_v25 }
 0x184   : > { %v1476_v51 = vadd.f32 %v1407_v15, %v1380_v49  ;;  %v1378_v34 = vmul.f32 %v2390_v20, %v1282_v32  ;;  %v1285_v55 = vadd.f32 %v1948_v45, %v1085_v43  ;;  %v1083_v36 = vadd.f32 %v1022_v41, %v883_v50  ;;  %v2514_v15 = vpop.permute.xlu1 %1436  ;;  %v2534_v41 = vpop.permute.xlu0 %1441 }
 0x185   : > { %v1931_v40 = vpop.f32.mrf.mxu1  ;;  %v1951_v56 = vpop.f32.mrf.mxu0  ;;  %v887_v61 = vadd.f32 %v2452_v1, %v655_v37  ;;  %v892_v48 = vadd.f32 %v2456_v3, %v676_v6  ;;  %v671_v3 = vadd.f32 %v2468_v10, %v2412_v33  ;;  %v692_v10 = vadd.f32 %v2472_v12, %v2416_v35  ;;  %v2623_v37 = vld [vmem:[#allocation2_spill] sm:$0xff] }
 0x186   : > { %v1492_v58 = vmax.f32 %v1476_v51, 0.0  ;;  %v1474_v60 = vadd.f32 %v1397_v7, %v1378_v34  ;;  %v1381_v20 = vmul.f32 %v2394_v22, %v1285_v55  ;;  %v1283_v62 = vadd.f32 %v1222_v47, %v1083_v36 }
 0x187   : > { %v1088_v46 = vadd.f32 %v1931_v40, %v888_v53  ;;  %v1035_v57 = vpop.f32.mrf.mxu1  ;;  %v1235_v59 = vpop.f32.mrf.mxu0  ;;  %v2624_v40 = vld [vmem:[#allocation14_spill] sm:$0xff] }
 0x188   : > { %1509 = vst.msk [vmem:[%s2505_s15 + $0x10] sm:$0xff] %vm1506_vm1, %v1492_v58  ;;  %v1490_v42 = vmax.f32 %v1474_v60, 0.0  ;;  %v1477_v0 = vadd.f32 %v1412_v54, %v1381_v20  ;;  %v1379_v7 = vmul.f32 %v2388_v19, %v1283_v62  ;;  %v1086_v22 = vadd.f32 %v1035_v57, %v886_v21  ;;  %v2625_v60 = vld [vmem:[#allocation7_spill] sm:$0xff]  ;;  %v2626_v62 = vld [vmem:[#allocation13_spill] sm:$0xff]  ;;  %v1452_v57 = vpop.permute.xlu0 %1451 }
 0x189   : > { %v1288_v16 = vadd.f32 %v1951_v56, %v1088_v46  ;;  %v1932_v17 = vpop.f32.mrf.mxu1  ;;  %v1952_v24 = vpop.f32.mrf.mxu0  ;;  %v668_v54 = vadd.f32 %v2458_v4, %v2400_v27  ;;  %v679_v19 = vadd.f32 %v2464_v8, %v2404_v29  ;;  %v684_v56 = vadd.f32 %v2624_v40, %v2623_v37 }
 0x18a   : > { %1507 = vst.msk [vmem:[%s2505_s15] sm:$0xff] %vm1506_vm1, %v1490_v42  ;;  %v1493_v25 = vmax.f32 %v1477_v0, 0.0  ;;  %v1475_v2 = vadd.f32 %v2476_v14, %v1379_v7  ;;  %v1286_v44 = vadd.f32 %v1235_v59, %v1086_v22  ;;  %v1089_v26 = vadd.f32 %v1932_v17, %v889_v63  ;;  %v1447_v29 = vpop.permute.xlu1 %1446  ;;  %v2627_v22 = vld [vmem:[#allocation15_spill] sm:$0xff] }
 0x18b   : > { %v1384_v1 = vmul.f32 %v2408_v31, %v1288_v16  ;;  %v1038_v45 = vpop.f32.mrf.mxu1  ;;  %v1238_v50 = vpop.f32.mrf.mxu0  ;;  %v890_v51 = vadd.f32 %v2460_v5, %v668_v54  ;;  %v893_v33 = vadd.f32 %v2466_v9, %v679_v19  ;;  %v896_v63 = vadd.f32 %v2626_v62, %v692_v10  ;;  %v2629_v16 = vld [vmem:[#allocation16_spill] sm:$0xff] }
 0x18c   : > { %1510 = vst.msk [vmem:[%s2505_s15 + $0x18] sm:$0xff] %vm1506_vm1, %v1493_v25  ;;  %v1491_v49 = vmax.f32 %v1475_v2, 0.0  ;;  %v1382_v14 = vmul.f32 %v2396_v23, %v1286_v44  ;;  %v1289_v32 = vadd.f32 %v1952_v24, %v1089_v26  ;;  %v1087_v43 = vadd.f32 %v1038_v45, %v887_v61  ;;  %v2628_v61 = vld [vmem:[#allocation4_spill] sm:$0xff]  ;;  %v2630_v24 = vld [vmem:[#allocation5_spill] sm:$0xff]  ;;  %v2631_v25 = vld [vmem:[#allocation18_spill] sm:$0xff] }
 0x18d   : > { %v1480_v52 = vadd.f32 %v1427_v28, %v1384_v1  ;;  %v1935_v27 = vpop.f32.mrf.mxu1  ;;  %v1955_v4 = vpop.f32.mrf.mxu0  ;;  %v695_v17 = vadd.f32 %v2629_v16, %v2628_v61  ;;  %v687_v2 = vadd.f32 %v2631_v25, %v2630_v24  ;;  %v2632_v44 = vld [vmem:[#allocation3_spill] sm:$0xff]  ;;  %v2633_v1 = vld [vmem:[#allocation8_spill] sm:$0xff] }
 0x18e   : > { %1508 = vst.msk [vmem:[%s2505_s15 + $0x8] sm:$0xff] %vm1506_vm1, %v1491_v49  ;;  %v1478_v31 = vadd.f32 %v2490_v39, %v1382_v14  ;;  %v1385_v8 = vmul.f32 %v2422_v38, %v1289_v32  ;;  %v1287_v47 = vadd.f32 %v1238_v50, %v1087_v43  ;;  %v1092_v23 = vadd.f32 %v1935_v27, %v892_v48  ;;  %v1457_v59 = vpop.permute.xlu1 %1456 }
 0x18f   : > { %v1496_v28 = vmax.f32 %v1480_v52, 0.0  ;;  %v1051_v34 = vpop.f32.mrf.mxu1  ;;  %v1251_v55 = vpop.f32.mrf.mxu0  ;;  %v891_v38 = vadd.f32 %v2470_v11, %v671_v3  ;;  %v2634_v52 = vld [vmem:[#allocation6_spill] sm:$0xff] }
 0x190   : > { %v1494_v36 = vmax.f32 %v1478_v31, 0.0  ;;  %v1481_v53 = vadd.f32 %v1432_v13, %v1385_v8  ;;  %v1383_v39 = vmul.f32 %v2406_v30, %v1287_v47  ;;  %v1292_v21 = vadd.f32 %v1955_v4, %v1092_v23  ;;  %v2635_v31 = vld [vmem:[#allocation17_spill] sm:$0xff]  ;;  %v2636_v47 = vld [vmem:[#allocation19_spill] sm:$0xff] }
 0x191   : > { %1513 = vst.msk [vmem:[%s2505_s15 + $0x30] sm:$0xff] %vm1506_vm1, %v1496_v28  ;;  %v1090_v5 = vadd.f32 %v1051_v34, %v890_v51  ;;  %v1936_v9 = vpop.f32.mrf.mxu1  ;;  %v1956_v58 = vpop.f32.mrf.mxu0  ;;  %v897_v8 = vadd.f32 %v2635_v31, %v695_v17  ;;  %v895_v23 = vadd.f32 %v2636_v47, %v687_v2 }
 0x192   : > { %1511 = vst.msk [vmem:[%s2505_s15 + $0x20] sm:$0xff] %vm1506_vm1, %v1494_v36  ;;  %v1497_v35 = vmax.f32 %v1481_v53, 0.0  ;;  %v1479_v12 = vadd.f32 %v2497_v18, %v1383_v39  ;;  %v1388_v20 = vmul.f32 %v2625_v60, %v1292_v21  ;;  %v1093_v30 = vadd.f32 %v1936_v9, %v893_v33  ;;  %v1462_v28 = vpop.permute.xlu0 %1461  ;;  %v1467_v39 = vpop.permute.xlu1 %1466 }
 0x193   : > { %v1290_v11 = vadd.f32 %v1251_v55, %v1090_v5  ;;  %v1054_v6 = vpop.f32.mrf.mxu1  ;;  %v1254_v46 = vpop.f32.mrf.mxu0  ;;  %v894_v18 = vadd.f32 %v2627_v22, %v684_v56  ;;  %v2637_v55 = vld [vmem:[#allocation11_spill] sm:$0xff]  ;;  %v2638_v56 = vld [vmem:[#allocation9_spill] sm:$0xff] }
 0x194   : > { %1514 = vst.msk [vmem:[%s2505_s15 + $0x38] sm:$0xff] %vm1506_vm1, %v1497_v35  ;;  %v1495_v13 = vmax.f32 %v1479_v12, 0.0  ;;  %v1484_v42 = vadd.f32 %v1447_v29, %v1388_v20  ;;  %v1293_v0 = vadd.f32 %v1956_v58, %v1093_v30  ;;  %v1091_v7 = vadd.f32 %v1054_v6, %v891_v38  ;;  %v2639_v20 = vld [vmem:[#allocation12_spill] sm:$0xff] }
 0x195   : > { %v1386_v26 = vmul.f32 %v2632_v44, %v1290_v11  ;;  %v1939_v48 = vpop.f32.mrf.mxu1  ;;  %v1959_v54 = vpop.f32.mrf.mxu0  ;;  %v2640_v11 = vld [vmem:[#allocation10_spill] sm:$0xff] }
 0x196   : > { %1512 = vst.msk [vmem:[%s2505_s15 + $0x28] sm:$0xff] %vm1506_vm1, %v1495_v13  ;;  %v1500_v19 = vmax.f32 %v1484_v42, 0.0  ;;  %v1389_v45 = vmul.f32 %v2633_v1, %v1293_v0  ;;  %v1291_v50 = vadd.f32 %v1254_v46, %v1091_v7  ;;  %v1096_v49 = vadd.f32 %v1939_v48, %v896_v63  ;;  %v1472_v62 = vpop.permute.xlu0 %1471 }
 0x197   : > { %v1482_v14 = vadd.f32 %v2514_v15, %v1386_v26  ;;  %v1067_v32 = vpop.f32.mrf.mxu1  ;;  %v1267_v43 = vpop.f32.mrf.mxu0 }
 0x198   : > { %1517 = vst.msk [vmem:[%s2505_s15 + $0x50] sm:$0xff] %vm1506_vm1, %v1500_v19  ;;  %v1485_v3 = vadd.f32 %v1452_v57, %v1389_v45  ;;  %v1387_v27 = vmul.f32 %v2634_v52, %v1291_v50  ;;  %v1296_v4 = vadd.f32 %v1959_v54, %v1096_v49  ;;  %v1094_v29 = vadd.f32 %v1067_v32, %v894_v18 }
 0x199   : > { %v1498_v51 = vmax.f32 %v1482_v14, 0.0  ;;  %v1940_v33 = vpop.f32.mrf.mxu1  ;;  %v1960_v10 = vpop.f32.mrf.mxu0 }
 0x19a   : > { %v1501_v15 = vmax.f32 %v1485_v3, 0.0  ;;  %v1483_v34 = vadd.f32 %v2534_v41, %v1387_v27  ;;  %v1392_v36 = vmul.f32 %v2637_v55, %v1296_v4  ;;  %v1294_v53 = vadd.f32 %v1267_v43, %v1094_v29 }
 0x19b   : > { %1515 = vst.msk [vmem:[%s2505_s15 + $0x40] sm:$0xff] %vm1506_vm1, %v1498_v51  ;;  %v1097_v21 = vadd.f32 %v1940_v33, %v897_v8  ;;  %v1070_v38 = vpop.f32.mrf.mxu1  ;;  %v1270_v41 = vpop.f32.mrf.mxu0 }
 0x19c   : > { %1518 = vst.msk [vmem:[%s2505_s15 + $0x58] sm:$0xff] %vm1506_vm1, %v1501_v15  ;;  %v1499_v37 = vmax.f32 %v1483_v34, 0.0  ;;  %v1488_v40 = vadd.f32 %v1467_v39, %v1392_v36  ;;  %v1390_v5 = vmul.f32 %v2638_v56, %v1294_v53  ;;  %v1095_v9 = vadd.f32 %v1070_v38, %v895_v23 }
 0x19d   : > { %v1297_v58 = vadd.f32 %v1960_v10, %v1097_v21 }
 0x19e   : > { %1516 = vst.msk [vmem:[%s2505_s15 + $0x48] sm:$0xff] %vm1506_vm1, %v1499_v37  ;;  %v1504_v35 = vmax.f32 %v1488_v40, 0.0  ;;  %v1486_v12 = vadd.f32 %v1457_v59, %v1390_v5  ;;  %v1295_v60 = vadd.f32 %v1270_v41, %v1095_v9 }
 0x19f   : > { %v1393_v30 = vmul.f32 %v2639_v20, %v1297_v58 }
 0x1a0   : > { %1521 = vst.msk [vmem:[%s2505_s15 + $0x70] sm:$0xff] %vm1506_vm1, %v1504_v35  ;;  %v1502_v63 = vmax.f32 %v1486_v12, 0.0  ;;  %v1391_v6 = vmul.f32 %v2640_v11, %v1295_v60 }
 0x1a1   : > { %v1489_v46 = vadd.f32 %v1472_v62, %v1393_v30 }
 0x1a2   : > { %1519 = vst.msk [vmem:[%s2505_s15 + $0x60] sm:$0xff] %vm1506_vm1, %v1502_v63  ;;  %v1487_v57 = vadd.f32 %v1462_v28, %v1391_v6 }
 0x1a3   : > { %v1505_v13 = vmax.f32 %v1489_v46, 0.0 }
 0x1a4   : > { %v1503_v42 = vmax.f32 %v1487_v57, 0.0 }
 0x1a5   : > { %1522 = vst.msk [vmem:[%s2505_s15 + $0x78] sm:$0xff] %vm1506_vm1, %v1505_v13 }
 0x1a6   : > { %1520 = vst.msk [vmem:[%s2505_s15 + $0x68] sm:$0xff] %vm1506_vm1, %v1503_v42 }
 0x1a7 PF: > { %s14_s17 = sadd.s32 1, %s2060_s17   ;;  %s2641_s15 = smov %s2056_s16 }
 0x1a8   : > { %p11_p5 = scmp.ge.s32.totalorder %s14_s17, 4   ;;  %s2642_s16 = smov %s2644_s18 }
 0x1aa   :  { %13 = sbr.rel (!%p11_p5) target bundleno = 2 (0x2), region = 79 }

</bundles_post_ra>
